<compile_context>
chip_gen: v7x
topology: tpu7x:2x2x1
jax: 0.10.0
libtpu: 0.0.40
codegen_flags: <defaults>
</compile_context>

<pallas_src>
import jax
import jax.numpy as jnp
from jax.experimental import pallas as pl
from jax.experimental.pallas import tpu as pltpu


def _silu_f32(h):
    """SiLU(h) = h / (1 + exp(-h)), f32 in / f32 out.

    exp and the approximate reciprocal both run on the EUP (whose slot is
    otherwise idle here), avoiding jax.nn.sigmoid's select/compare chain on
    the VPU and its exact divide.
    """
    return h * pl.reciprocal(1.0 + jnp.exp(-h), approx=True)


def antecedent_kernel(x_ref, w1_ref, b1_ref, w2_ref, b2_ref, w3_ref, b3_ref,
                      o_ref):
    """Fused 3-layer MLP with SiLU; batch lives on the lane axis.

    x_ref : (in_dim, tile_b)  bf16
    w1_ref: (hidden, in_dim)  bf16     b1_ref: (hidden, 1)  f32
    w2_ref: (hidden4, hidden) bf16     b2_ref: (hidden4, 1) f32
    w3_ref: (hidden4, 1)      f32      b3_ref: (1,)         f32 (SMEM scalar)
    o_ref : (1, tile_b)
    """
    x = x_ref[...]                                               # (in_dim, tb)

    # Layer 1: (hidden, in_dim) @ (in_dim, tb) -> (hidden, tb), f32 accumulate.
    h1 = jnp.dot(w1_ref[...], x, preferred_element_type=jnp.float32)
    a1 = _silu_f32(h1 + b1_ref[...]).astype(jnp.bfloat16)        # one cast, feeds MXU

    # (Dropout: identity in eval mode.)

    # Layer 2: (hidden4, hidden) @ (hidden, tb) -> (hidden4, tb), f32 accumulate.
    h2 = jnp.dot(w2_ref[...], a1, preferred_element_type=jnp.float32)
    a2 = _silu_f32(h2 + b2_ref[...])                             # (hidden4, tb) f32

    # Layer 3: Linear(hidden4 -> 1) as broadcast-mul + sublane reduce
    # (keeps the degenerate N=1 matmul off the MXU; VPU/XLU slots are idle here).
    out = jnp.sum(a2 * w3_ref[...], axis=0, keepdims=True) + b3_ref[0]

    o_ref[...] = out.astype(o_ref.dtype)


def _pick_tile_b(batch, max_tile=4096):
    """Lane-dense batch tile.

    Prefer >= 4 grid steps (two pipelined steps per TensorCore on v7x's two
    cores), then >= 2 (single-TC v5e/v6e pipelining), then any divisor.
    Sweep `max_tile` per generation; cap around 512-1024 on v5e, where the
    f32 activations at large tiles start spilling into its single vst slot.
    """
    candidates = [t for t in (16384, 8192, 4096, 2048, 1024, 512, 256, 128)
                  if t <= max_tile]
    for min_steps in (4, 2, 1):
        for t in candidates:
            if batch % t == 0 and batch // t >= min_steps:
                return t
    return batch  # tiny / ragged batch: single full-extent block


def prepare_params(params):
    """One-time conversion of PyTorch-layout params to the kernel layout.

    Hoisted out of the per-call path so the forward issues no extra XLA
    cast/reshape ops (perf-review item).
    """
    w1, b1, w2, b2, w3, b3 = params
    hidden, _ = w1.shape
    hidden4 = w2.shape[0]
    return (
        jnp.asarray(w1, jnp.bfloat16),                        # (hidden, in_dim)
        jnp.asarray(b1, jnp.float32).reshape(hidden, 1),
        jnp.asarray(w2, jnp.bfloat16),                        # (hidden4, hidden)
        jnp.asarray(b2, jnp.float32).reshape(hidden4, 1),
        jnp.asarray(w3, jnp.float32).reshape(hidden4, 1),     # column, stays f32
        jnp.asarray(b3, jnp.float32).reshape(1),              # 1-D SMEM scalar
    )


def prepare_input(x):
    """One-time layout change: (B, in_dim) f32 -> (in_dim, B) bf16.

    In a real pipeline, fuse this transpose/cast into whatever produces x
    upstream; as a standalone per-call op it is pure HBM traffic.
    """
    return jnp.asarray(x, jnp.bfloat16).T


def antecedent_forward(x_t, kparams, *, tile_b=None, max_tile=4096,
                       out_dtype=jnp.float32):
    """Forward pass on kernel-layout inputs.

    x_t     : (in_dim, B) bf16  -- see prepare_input().
    kparams : output of prepare_params().
    Returns : (B, 1) out_dtype  (use bf16 to halve the output HBM stream if
              the consumer tolerates it).
    """
    w1, b1, w2, b2, w3, b3 = kparams
    in_dim, batch = x_t.shape
    hidden = w1.shape[0]
    hidden4 = w2.shape[0]

    if tile_b is None:
        tile_b = _pick_tile_b(batch, max_tile)
    assert batch % tile_b == 0, "no remainder-tile path for ragged batches"
    assert tile_b % 128 == 0 or tile_b == batch, "tile_b must be lane-dense"
    grid = (batch // tile_b,)

    rep = lambda shape: pl.BlockSpec(shape, lambda i: (0, 0))

    out = pl.pallas_call(
        antecedent_kernel,
        out_shape=jax.ShapeDtypeStruct((1, batch), out_dtype),
        grid_spec=pltpu.PrefetchScalarGridSpec(
            num_scalar_prefetch=0,
            grid=grid,
            in_specs=[
                pl.BlockSpec((in_dim, tile_b), lambda i: (0, i)),   # x^T (streamed)
                rep((hidden, in_dim)),       # w1 (resident)
                rep((hidden, 1)),            # b1
                rep((hidden4, hidden)),      # w2
                rep((hidden4, 1)),           # b2
                rep((hidden4, 1)),           # w3 column
                pl.BlockSpec(memory_space=pltpu.MemorySpace.SMEM),  # b3 scalar
            ],
            out_specs=pl.BlockSpec((1, tile_b), lambda i: (0, i)),  # lane-dense
        ),
        compiler_params=pltpu.CompilerParams(
            dimension_semantics=("parallel",)),
    )(x_t, w1, b1, w2, b2, w3, b3)

    return out.reshape(batch, 1)


def init_params(key, in_dim, hidden_dim):
    """Deterministic synthetic parameter init, PyTorch nn.Linear layout."""
    hidden4 = hidden_dim // 4
    k = jax.random.split(key, 6)
    scale = 0.1
    w1 = scale * jax.random.normal(k[0], (hidden_dim, in_dim), jnp.float32)
    b1 = scale * jax.random.normal(k[1], (hidden_dim,), jnp.float32)
    w2 = scale * jax.random.normal(k[2], (hidden4, hidden_dim), jnp.float32)
    b2 = scale * jax.random.normal(k[3], (hidden4,), jnp.float32)
    w3 = scale * jax.random.normal(k[4], (1, hidden4), jnp.float32)
    b3 = scale * jax.random.normal(k[5], (1,), jnp.float32)
    return (w1, b1, w2, b2, w3, b3)


def reference_forward(x, params):
    """Pure-JAX f32 reference (eval-mode: dropout = identity)."""
    w1, b1, w2, b2, w3, b3 = params
    h = jax.nn.silu(x @ w1.T + b1)
    h = jax.nn.silu(h @ w2.T + b2)
    return h @ w3.T + b3


if __name__ == "__main__":
    # Small shapes consistent with the module: batch=256, in_dim=16, hidden=32
    # -> tile_b=128, grid=(2,) (>=2 pipelined steps; >=4 would need larger B).
    B, IN_DIM, HIDDEN = 256, 16, 32
    key = jax.random.PRNGKey(0)
    kx, kp = jax.random.split(key)
    x = jax.random.normal(kx, (B, IN_DIM), jnp.float32)
    params = init_params(kp, IN_DIM, HIDDEN)

    # One-time layout/dtype preparation, outside the per-call hot path.
    kparams = prepare_params(params)
    x_t = prepare_input(x)

    fwd = jax.jit(antecedent_forward)
    out = jax.block_until_ready(fwd(x_t, kparams))

    ref = reference_forward(x, params)
    assert out.shape == (B, 1)
    max_err = jnp.max(jnp.abs(out - ref))
    # bf16 streaming operands + bf16 layer-1 activation + approx reciprocal
    # -> loose-but-meaningful tolerance vs the f32 reference.
    assert max_err < 3e-2, f"max err {max_err}"

    print("KERNEL_OK")
</pallas_src>

<mosaic_0001>
module attributes {stable_mosaic.version = 11 : i64} {
  func.func @antecedent_kernel(%arg0: i32, %arg1: memref<16x128xbf16, #tpu.memory_space<vmem>>, %arg2: memref<32x16xbf16, #tpu.memory_space<vmem>>, %arg3: memref<32x1xf32, #tpu.memory_space<vmem>>, %arg4: memref<8x32xbf16, #tpu.memory_space<vmem>>, %arg5: memref<8x1xf32, #tpu.memory_space<vmem>>, %arg6: memref<8x1xf32, #tpu.memory_space<vmem>>, %arg7: memref<1xf32, #tpu.memory_space<smem>>, %arg8: memref<1x128xf32, #tpu.memory_space<vmem>>) attributes {dimension_semantics = [#tpu.dimension_semantics<parallel>], iteration_bounds = array<i64: 2>, scalar_prefetch = 0 : i64, scratch_operands = 0 : i64, tpu.core_type = #tpu.core_type<tc>, window_params = [{transform_indices = @transform_0, window_bounds = array<i64: 16, 128>}, {pipeline_mode = #tpu.pipeline_mode<synchronous>, transform_indices = @transform_1, window_bounds = array<i64: 32, 16>}, {pipeline_mode = #tpu.pipeline_mode<synchronous>, transform_indices = @transform_2, window_bounds = array<i64: 32, 1>}, {pipeline_mode = #tpu.pipeline_mode<synchronous>, transform_indices = @transform_3, window_bounds = array<i64: 8, 32>}, {pipeline_mode = #tpu.pipeline_mode<synchronous>, transform_indices = @transform_4, window_bounds = array<i64: 8, 1>}, {pipeline_mode = #tpu.pipeline_mode<synchronous>, transform_indices = @transform_5, window_bounds = array<i64: 8, 1>}, {transform_indices = @transform_6, window_bounds = array<i64: 1>}, {transform_indices = @transform_7, window_bounds = array<i64: 1, 128>}]} {
    %c0 = arith.constant 0 : index
    %c0_0 = arith.constant 0 : index
    %0 = vector.load %arg1[%c0, %c0_0] : memref<16x128xbf16, #tpu.memory_space<vmem>>, vector<16x128xbf16>
    %c0_1 = arith.constant 0 : index
    %c0_2 = arith.constant 0 : index
    %1 = vector.load %arg2[%c0_1, %c0_2] : memref<32x16xbf16, #tpu.memory_space<vmem>>, vector<32x16xbf16>
    %cst = arith.constant dense<0.000000e+00> : vector<32x128xf32>
    %2 = tpu.matmul %1, %0, %cst {dimension_numbers = #tpu.dot_dimension_numbers<[1], [0], [0], [1], [0, 0, 1, 1], [], []>} : vector<32x16xbf16>, vector<16x128xbf16>, vector<32x128xf32> -> vector<32x128xf32>
    %c0_3 = arith.constant 0 : index
    %c0_4 = arith.constant 0 : index
    %3 = vector.load %arg3[%c0_3, %c0_4] : memref<32x1xf32, #tpu.memory_space<vmem>>, vector<32x1xf32>
    %4 = vector.broadcast %3 : vector<32x1xf32> to vector<32x128xf32>
    %5 = arith.addf %2, %4 : vector<32x128xf32>
    %cst_5 = arith.constant 0.000000e+00 : f32
    %6 = vector.broadcast %cst_5 : f32 to vector<32x128xf32>
    %7 = arith.subf %6, %5 : vector<32x128xf32>
    %8 = math.exp %7 : vector<32x128xf32>
    %cst_6 = arith.constant 1.000000e+00 : f32
    %9 = vector.broadcast %cst_6 : f32 to vector<32x128xf32>
    %10 = arith.addf %9, %8 : vector<32x128xf32>
    %11 = tpu.reciprocal %10 {approx = true} : vector<32x128xf32> -> vector<32x128xf32>
    %12 = arith.mulf %5, %11 : vector<32x128xf32>
    %13 = arith.truncf %12 : vector<32x128xf32> to vector<32x128xbf16>
    %c0_7 = arith.constant 0 : index
    %c0_8 = arith.constant 0 : index
    %14 = vector.load %arg4[%c0_7, %c0_8] : memref<8x32xbf16, #tpu.memory_space<vmem>>, vector<8x32xbf16>
    %cst_9 = arith.constant dense<0.000000e+00> : vector<8x128xf32>
    %15 = tpu.matmul %14, %13, %cst_9 {dimension_numbers = #tpu.dot_dimension_numbers<[1], [0], [0], [1], [0, 0, 1, 1], [], []>} : vector<8x32xbf16>, vector<32x128xbf16>, vector<8x128xf32> -> vector<8x128xf32>
    %c0_10 = arith.constant 0 : index
    %c0_11 = arith.constant 0 : index
    %16 = vector.load %arg5[%c0_10, %c0_11] : memref<8x1xf32, #tpu.memory_space<vmem>>, vector<8x1xf32>
    %17 = vector.broadcast %16 : vector<8x1xf32> to vector<8x128xf32>
    %18 = arith.addf %15, %17 : vector<8x128xf32>
    %cst_12 = arith.constant 0.000000e+00 : f32
    %19 = vector.broadcast %cst_12 : f32 to vector<8x128xf32>
    %20 = arith.subf %19, %18 : vector<8x128xf32>
    %21 = math.exp %20 : vector<8x128xf32>
    %cst_13 = arith.constant 1.000000e+00 : f32
    %22 = vector.broadcast %cst_13 : f32 to vector<8x128xf32>
    %23 = arith.addf %22, %21 : vector<8x128xf32>
    %24 = tpu.reciprocal %23 {approx = true} : vector<8x128xf32> -> vector<8x128xf32>
    %25 = arith.mulf %18, %24 : vector<8x128xf32>
    %c0_14 = arith.constant 0 : index
    %c0_15 = arith.constant 0 : index
    %26 = vector.load %arg6[%c0_14, %c0_15] : memref<8x1xf32, #tpu.memory_space<vmem>>, vector<8x1xf32>
    %27 = vector.broadcast %26 : vector<8x1xf32> to vector<8x128xf32>
    %28 = arith.mulf %25, %27 : vector<8x128xf32>
    %cst_16 = arith.constant dense<0.000000e+00> : vector<128xf32>
    %29 = vector.multi_reduction <add>, %28, %cst_16 [0] : vector<8x128xf32> to vector<128xf32>
    %30 = vector.shape_cast %29 : vector<128xf32> to vector<1x128xf32>
    %c0_17 = arith.constant 0 : index
    %31 = memref.load %arg7[%c0_17] : memref<1xf32, #tpu.memory_space<smem>>
    %32 = vector.broadcast %31 : f32 to vector<1x128xf32>
    %33 = arith.addf %30, %32 : vector<1x128xf32>
    %c0_18 = arith.constant 0 : index
    %c0_19 = arith.constant 0 : index
    %34 = vector.load %arg8[%c0_18, %c0_19] : memref<1x128xf32, #tpu.memory_space<vmem>>, vector<1x128xf32>
    tpu.vector_store %arg8[%c0_18, %c0_19], %33 {strides = array<i32>} : memref<1x128xf32, #tpu.memory_space<vmem>>, vector<1x128xf32>,
    return
  }
  func.func @transform_0(%arg0: i32) -> (i32, i32) {
    %c0_i32 = arith.constant 0 : i32
    %c0_i32_0 = arith.constant 0 : i32
    return %c0_i32, %arg0 : i32, i32
  }
  func.func @transform_1(%arg0: i32) -> (i32, i32) {
    %c0_i32 = arith.constant 0 : i32
    %c0_i32_0 = arith.constant 0 : i32
    %c0_i32_1 = arith.constant 0 : i32
    return %c0_i32, %c0_i32_0 : i32, i32
  }
  func.func @transform_2(%arg0: i32) -> (i32, i32) {
    %c0_i32 = arith.constant 0 : i32
    %c0_i32_0 = arith.constant 0 : i32
    %c0_i32_1 = arith.constant 0 : i32
    return %c0_i32, %c0_i32_0 : i32, i32
  }
  func.func @transform_3(%arg0: i32) -> (i32, i32) {
    %c0_i32 = arith.constant 0 : i32
    %c0_i32_0 = arith.constant 0 : i32
    %c0_i32_1 = arith.constant 0 : i32
    return %c0_i32, %c0_i32_0 : i32, i32
  }
  func.func @transform_4(%arg0: i32) -> (i32, i32) {
    %c0_i32 = arith.constant 0 : i32
    %c0_i32_0 = arith.constant 0 : i32
    %c0_i32_1 = arith.constant 0 : i32
    return %c0_i32, %c0_i32_0 : i32, i32
  }
  func.func @transform_5(%arg0: i32) -> (i32, i32) {
    %c0_i32 = arith.constant 0 : i32
    %c0_i32_0 = arith.constant 0 : i32
    %c0_i32_1 = arith.constant 0 : i32
    return %c0_i32, %c0_i32_0 : i32, i32
  }
  func.func @transform_6(%arg0: i32) -> i32 {
    %c0_i32 = arith.constant 0 : i32
    %c0_i32_0 = arith.constant 0 : i32
    return %c0_i32 : i32
  }
  func.func @transform_7(%arg0: i32) -> (i32, i32) {
    %c0_i32 = arith.constant 0 : i32
    %c0_i32_0 = arith.constant 0 : i32
    return %c0_i32, %arg0 : i32, i32
  }
}

</mosaic_0001>

<bundles_post_ra>
// kernel: antecedent_forward.1
= control target key start
LH: loop header
LB: loop body
LE: loop exit
PB: predicated region body
PF: predicated region fallthrough
CT: control target
= control target key end

     0   :  { %s952_s0 = inlined_call_operand.vmem [shape: bf16[16,256], index: 0, kind: input, shape index: {}]   ;;  %s953_s1 = inlined_call_operand.vmem [shape: bf16[32,16], index: 1, kind: input, shape index: {}]   ;;  %s954_s2 = inlined_call_operand.vmem [shape: f32[32,1], index: 2, kind: input, shape index: {}]   ;;  %s955_s3 = inlined_call_operand.vmem [shape: bf16[8,32], index: 3, kind: input, shape index: {}]   ;;  %s956_s4 = inlined_call_operand.vmem [shape: f32[8,1], index: 4, kind: input, shape index: {}]   ;;  %s957_s5 = inlined_call_operand.vmem [shape: f32[8,1], index: 5, kind: input, shape index: {}]   ;;  %s958_s6 = inlined_call_operand.<no memory space> [shape: f32[1], index: 6, kind: input, shape index: {}]   ;;  %s959_s7 = inlined_call_operand.hbm [shape: f32[1,256], index: 7, kind: output, shape index: {}]  }
   0x1   :  { %12 = sst [smem:[#allocation2]] %s958_s6 }
   0x2   :  { %13 = vsyncpa [#allocation5], 0 }
   0x3   :  { %15 = vsyncpa [#allocation5 + $0x1], 0  ;;  %s813_s26 = smov 0   ;;  %s815_s27 = smov 0  }
   0x4   :  { %s817_s28 = smov 0   ;;  %s819_s29 = smov 0  }
   0x5 LB: > { %s598_s6 = sadd.s32 4294967295, %s764_s29   ;;  %s599_s30 = sadd.s32 4294967294, %s764_s29   ;;  %s764_s29 = sphi %s819_s29, %s965_s29   ;;  %s760_s28 = sphi %s817_s28, %s964_s28   ;;  %s756_s27 = sphi %s815_s27, %s963_s27   ;;  %s752_s26 = sphi %s813_s26, %s962_s26  }
   0x6   : > { %s836_s8 = sadd.s32 1, %s764_s29   ;;  %s28_s9 = sadd.s32 1, %s760_s28 }
   0x7   : > { %s25_s10 = ssub.s32 %s764_s29, %s836_s8  ;;  %p35_p0 = scmp.ne.s32.totalorder %s760_s28, %s756_s27 }
   0x8   : > { %p26_p1 = scmp.eq.s32.totalorder %s25_s10, 0  ;;  %p36_p2 = scmp.eq.s32.totalorder %s764_s29, 0 }
   0x9   : > { %p191_p3 = scmp.eq.s32.totalorder %s598_s6, 1  ;;  %p196_p4 = scmp.ne.s32.totalorder %s756_s27, %s752_s26 }
   0xa   : > { %s849_s11 = scalar_select %p26_p1, %s760_s28, %s28_s9  }
   0xb   : > { %p37_p5 = por %p36_p2, %p35_p0  ;;  %p851_p6 = por %p191_p3, %p35_p0 }
   0xc   : > { %p197_p7 = scmp.eq.s32.totalorder %s599_s30, 1  ;;  %p601_p9 = scmp.ge.s32.totalorder %s764_s29, 2 }
   0xe   : > { %p855_p8 = por %p197_p7, %p196_p4  ;;  %231 = sbr.rel (%p601_p9) target bundleno = 28 (0x1c), region = 40 }
  0x15   : > { %234 = sbr.rel (!%p37_p5) target bundleno = 28 (0x1c), region = 44  ;;  %s236_s14 = sand.u32 (%p37_p5), 1, %s760_s28  }
  0x16   : > { %s603_s15 = sshll.u32 (%p37_p5), %s764_s29, 2  ;;  %s602_s16 = sshll.u32 (%p37_p5), %s236_s14, 3 }
  0x17   : > { %s240_s19 = scalar_lea.vmem (%p37_p5), %s952_s0, %s603_s15  ;;  %s238_s20 = scalar_lea.vmem (%p37_p5), [#allocation3], %s602_s16 }
  0x18   : > { %v256_v0 = vld [vmem:[%s240_s19] sm:$0xf] (%p37_p5)  ;;  %v258_v1 = vld [vmem:[%s240_s19 + $0x8] sm:$0xf] (%p37_p5) }
  0x19   : > { %257 = vst [vmem:[%s238_s20] sm:$0xf] (%p37_p5), %v256_v0  ;;  %259 = vst [vmem:[%s238_s20 + $0x4] sm:$0xf] (%p37_p5), %v258_v1 }
  0x1c PF: > { %p604_p10 = scmp.ge.s32.totalorder %s764_s29, 1  ;;  %p285_p11 = scmp.lt.s32.totalorder %s764_s29, 3 }
  0x1e   : > { %p286_p12 = pnand %p604_p10, %p285_p11 }
  0x1f   : > { %s870_s21 = sand.u32 (!%p286_p12), 1, %s756_s27   ;;  %v680_v2 = vld [vmem:[%s953_s1] sm:$0xff] (!%p286_p12)   ;;  %vm369_vm0 = vcmask (!%p286_p12), 130048   ;;  %v331_v4 = vld [vmem:[%s954_s2 + $0x10] sm:$0xff] (!%p286_p12)  ;;  %v766_v6 = vmov (!%p286_p12), 0   ;;  %v681_v7 = vld [vmem:[%s953_s1 + $0x8] sm:$0xff] (!%p286_p12)  }
  0x20   : > { %289 = sbr.rel (%p286_p12) target bundleno = 569 (0x239), region = 85  ;;  %s605_s24 = sshll.u32 (!%p286_p12), %s870_s21, 3  ;;  %623 = vmatprep.mubr.msk.bf16.mxu0 (!%p286_p12), %vm369_vm0, %v680_v2  ;;  %v329_v3 = vld [vmem:[%s954_s2] sm:$0xff] (!%p286_p12)  ;;  %677 = vset.pattern.permute.xlu0 (!%p286_p12), %v766_v6  ;;  %v330_v8 = vld [vmem:[%s954_s2 + $0x8] sm:$0xff] (!%p286_p12)  ;;  %v332_v9 = vld [vmem:[%s954_s2 + $0x18] sm:$0xff] (!%p286_p12)  ;;  %v767_v12 = vmov (!%p286_p12), 0.0  }
  0x21   : > { %s294_s14 = scalar_lea.vmem (!%p286_p12), [#allocation3], %s605_s24  ;;  %678 = vset.pattern.permute.xlu1 (!%p286_p12), %v766_v6  ;;  %335 = vperm.xlu0 (!%p286_p12), %677, %v329_v3   ;;  %v452_v10 = vld [vmem:[%s956_s4] sm:$0xff] (!%p286_p12)  ;;  %vm768_vm1 = vmmov (!%p286_p12), 0   ;;  %vm458_vm2 = vcmask (!%p286_p12), 261120   ;;  %s521_s10 = sld [smem:[#allocation2]] (!%p286_p12) }
  0x22   : > { %v679_v5 = vld [vmem:[%s294_s14] sm:$0xff] (!%p286_p12)   ;;  %345 = vperm.xlu1 (!%p286_p12), %678, %v331_v4   ;;  %627 = vmatprep.subr.bf16.mxu1 (!%p286_p12), %v767_v12  ;;  %s612_s14 = sshll.u32 (!%p286_p12), %s598_s6, 4  ;;  %s321_s15 = scalar_lea.vmem (!%p286_p12), [#allocation4], %s870_s21 }
  0x23   : > { %621 = vmatprep.subr.bf16.mxu0 (!%p286_p12), %v679_v5  ;;  %v508_v11 = vld [vmem:[%s957_s5] sm:$0xff] (!%p286_p12)  ;;  %631 = vmatprep.mubr.msk.bf16.mxu1 (!%p286_p12), %vm768_vm1, %v767_v12  ;;  %s538_s16 = sshll.u32 (!%p286_p12), %s321_s15, 4  ;;  %s908_s19 = scalar_lea.hbm (!%p286_p12), %s959_s7, %s612_s14  ;;  %s910_s16 = int_to_ptr.vmem [resolvable:$true] %s538_s16 }
  0x24   : > { %622 = vmatpush3.bf16.msra.mxu0 (!%p286_p12), %v679_v5  ;;  %v451_v51 = vld [vmem:[%s955_s3] sm:$0xf] (!%p286_p12)  ;;  %s526_s20 = scalar_lea.sflag (!%p286_p12), [#allocation5], %s870_s21  ;;  %s702_s22 = scalar_lea.vmem (!%p286_p12), %s910_s16, 16 }
  0x25   : > { %340 = vperm.xlu0 (!%p286_p12), %677, %v330_v8   ;;  %p703_p13 = scmp.ne.s32.totalorder (!%p286_p12), %s910_s16, %s702_s22  ;;  %s769_s6 = smov (!%p286_p12), [#allocation4]  }
  0x26   : > { %350 = vperm.xlu1 (!%p286_p12), %678, %v332_v9   ;;  %s706_s23 = sshll.u32 (!%p286_p12), %s769_s6, 4  ;;  %s707_s23 = int_to_ptr.vmem [resolvable:$false] %s706_s23 }
  0x27   : > { %624 = vmatmul.mubr.msk.bf16.vlgmr.msra.gmra.mrb[0].mxu0 %vm369_vm0, %v681_v7  ;;  %v522_v7 = vstv %s521_s10  ;;  %p704_p0 = pnand %p703_p13, %p851_p6  ;;  %s708_s24 = scalar_lea.vmem %s707_s23, 32 }
  0x28   : > { %p709_p2 = scmp.lt.s32.totalorder %s910_s16, %s707_s23  ;;  %p710_p3 = scmp.lt.s32.totalorder %s708_s24, %s702_s22 }
  0x29   : > { %455 = vperm.xlu0 %677, %v452_v10   ;;  %p705_p1 = pneg %p704_p0 }
  0x2a   : > { %511 = vperm.xlu1 %678, %v508_v11   ;;  %p711_p4 = por %p710_p3, %p709_p2 }
  0x2c   : > { %p712_p5 = pnand %p711_p4, %p705_p1 }
  0xa0   : > { %v336_v14 = vpop.permute.xlu0 %335 }
  0xa1   : > { %v346_v13 = vpop.permute.xlu1 %345 }
  0xa4   : > { %v341_v21 = vpop.permute.xlu0 %340 }
  0xa5   : > { %v351_v18 = vpop.permute.xlu1 %350 }
  0xa8   : > { %v456_v52 = vpop.permute.xlu0 %455 }
  0xa9   : > { %v512_v0 = vpop.permute.xlu1 %511 }
  0xfa   : > { %v625_v15 = vpop.f32.mrb[0].mxu0 }
  0xfb   : > { %v419_v16 = vadd.f32 %v625_v15, %v346_v13  ;;  %v410_v17 = vpop.f32.mrb[1].mxu0 }
  0xfc   : > { %v411_v19 = vadd.f32 %v410_v17, %v336_v14  ;;  %v626_v20 = vpop.f32.mrb[2].mxu0 }
  0xfd   : > { %v427_v22 = vsub.f32 0.0, %v419_v16  ;;  %v422_v23 = vadd.f32 %v626_v20, %v351_v18  ;;  %v413_v24 = vpop.f32.mrb[3].mxu0 }
  0xfe   : > { %v425_v25 = vsub.f32 0.0, %v411_v19  ;;  %v414_v26 = vadd.f32 %v413_v24, %v341_v21 }
  0xff   : > { %v433_v27 = vmul.f32 1.442695, %v427_v22  ;;  %v428_v28 = vsub.f32 0.0, %v422_v23 }
 0x100   : > { %v429_v29 = vmul.f32 1.442695, %v425_v25  ;;  %v426_v30 = vsub.f32 0.0, %v414_v26 }
 0x101   : > { %682 = vpow2.f32 %v433_v27  ;;  %v435_v31 = vmul.f32 1.442695, %v428_v28 }
 0x102   : > { %684 = vpow2.f32 %v429_v29  ;;  %v431_v32 = vmul.f32 1.442695, %v426_v30 }
 0x103   : > { %686 = vpow2.f32 %v435_v31 }
 0x104   : > { %688 = vpow2.f32 %v431_v32 }
 0x10b   : > { %v683_v33 = vpop.eup %682 }
 0x10c   : > { %v685_v34 = vpop.eup %684  ;;  %v439_v35 = vadd.f32 1.0, %v683_v33 }
 0x10d   : > { %v687_v36 = vpop.eup %686  ;;  %v437_v37 = vadd.f32 1.0, %v685_v34 }
 0x10e   : > { %v689_v38 = vpop.eup %688  ;;  %690 = vrcp.f32 %v439_v35  ;;  %v440_v39 = vadd.f32 1.0, %v687_v36 }
 0x10f   : > { %692 = vrcp.f32 %v437_v37  ;;  %v438_v40 = vadd.f32 1.0, %v689_v38 }
 0x110   : > { %694 = vrcp.f32 %v440_v39 }
 0x111   : > { %696 = vrcp.f32 %v438_v40 }
 0x118   : > { %v691_v41 = vpop.eup %690 }
 0x119   : > { %v693_v42 = vpop.eup %692  ;;  %v447_v45 = vmul.f32 %v691_v41, %v419_v16 }
 0x11a   : > { %v695_v43 = vpop.eup %694  ;;  %v445_v47 = vmul.f32 %v693_v42, %v411_v19 }
 0x11b   : > { %v697_v44 = vpop.eup %696  ;;  %v448_v46 = vmul.f32 %v695_v43, %v422_v23 }
 0x11c   : > { %v446_v48 = vmul.f32 %v697_v44, %v414_v26 }
 0x11d   : > { %v450_v49 = vpack.c.bf16 %v448_v46, %v447_v45 }
 0x11e   : > { %v449_v50 = vpack.c.bf16 %v446_v48, %v445_v47 }
 0x120   : > { %628 = vmatpush3.bf16.msra.mxu1 %v449_v50 }
 0x121   : > { %629 = vmatprep.subr.bf16.mxu1 %v767_v12 }
 0x124   : > { %630 = vmatpush3.bf16.msra.mxu1 %v450_v49 }
 0x127   : > { %632 = vmatmul.mubr.msk.bf16.vlgmr.msra.gmra.mrb[0].mxu1 %vm458_vm2, %v451_v51 }
 0x1fa   : > { %v496_v53 = vpop.f32.mrb[0].mxu1 }
 0x1fb   : > { %v497_v54 = vadd.f32 %v496_v53, %v456_v52  ;;  %v633_v55 = vpop.f32.mrb[1].mxu1 }
 0x1fc   : > { %v499_v56 = vpop.f32.mrb[2].mxu1 }
 0x1fd   : > { %v502_v57 = vsub.f32 0.0, %v497_v54  ;;  %v634_v58 = vpop.f32.mrb[3].mxu1 }
 0x1ff   : > { %v503_v59 = vmul.f32 1.442695, %v502_v57 }
 0x201   : > { %698 = vpow2.f32 %v503_v59 }
 0x20b   : > { %v699_v60 = vpop.eup %698 }
 0x20c   : > { %v505_v61 = vadd.f32 1.0, %v699_v60 }
 0x20e   : > { %700 = vrcp.f32 %v505_v61 }
 0x218   : > { %v701_v62 = vpop.eup %700 }
 0x219   : > { %v507_v63 = vmul.f32 %v701_v62, %v497_v54 }
 0x21b   : > { %v514_v1 = vmul.f32 %v512_v0, %v507_v63 }
 0x21d   : > { %v515_v2 = vrot.slane %v514_v1, 4 }
 0x21f   : > { %v516_v3 = vadd.f32 %v515_v2, %v514_v1 }
 0x221   : > { %v517_v4 = vrot.slane %v516_v3, 2 }
 0x223   : > { %v518_v5 = vadd.f32 %v517_v4, %v516_v3 }
 0x225   : > { %v519_v6 = vrot.slane %v518_v5, 1 }
 0x227   : > { %v520_v8 = vadd.f32 %v519_v6, %v518_v5 }
 0x229   : > { %v523_v9 = vadd.f32 %v522_v7, %v520_v8 }
 0x22b   : > { %524 = vst [vmem:[%s321_s15] sm:$0x1] %v523_v9 }
 0x22c   : > { %715 = shalt.err (!%p712_p5)
}
 0x22d   : > { %s716_s21 = scalar_lea.hbm %s908_s19, 16  ;;  %s720_s9 = scalar_lea.hbm %s959_s7, 32 }
 0x22e   : > { %p717_p7 = scmp.ne.s32.totalorder %s908_s19, %s716_s21  ;;  %p721_p12 = scmp.lt.u32.totalorder %s908_s19, %s959_s7 }
 0x22f   : > { %p722_p13 = scmp.lt.u32.totalorder %s720_s9, %s716_s21  ;;  %p724_p1 = scmp.lt.u32.totalorder %s716_s21, %s908_s19 }
 0x230   : > { %p718_p10 = pnand %p717_p7, %p851_p6 }
 0x231   : > { %p723_p0 = por %p722_p13, %p721_p12 }
 0x232   : > { %p719_p11 = pneg %p718_p10 }
 0x233   : > { %p725_p2 = por %p724_p1, %p723_p0 }
 0x235   : > { %p726_p3 = pnand %p725_p2, %p719_p11 }
 0x237   : > { %729 = shalt.err (!%p726_p3)
}
 0x238   : > { %635 = dma.vmem_to_hbm [thread:$0]  (%p851_p6), %s910_s16, 16, %s908_s19, %s526_s20  }
 0x239 PF: > { %s550_s15 = sand.u32 1, %s752_s26   ;;  %p638_p4 = pnand %p601_p9, %p855_p8 }
 0x23a   : > { %s551_s17 = scalar_lea.sflag [#allocation5], %s550_s15 }
 0x23b   : > { %747 = dma.done.wait (!%p638_p4), %s551_s17, 16  }
 0x23c   : > { %749 = vsyncadd (!%p638_p4), %s551_s17, 4294967280  ;;  %p18_p5 = scmp.ge.s32.totalorder %s836_s8, 4   ;;  %s962_s26 = smov %s756_s27 }
 0x23d   : > { %s963_s27 = smov %s760_s28  ;;  %s964_s28 = smov %s849_s11 }
 0x23e   : > { %s965_s29 = smov %s836_s8  ;;  %20 = sbr.rel (!%p18_p5) target bundleno = 5 (0x5), region = 129 }
 0x245   :  { %555 = vsyncpa [#allocation5], 1 }
 0x246   :  { %557 = vsyncpa [#allocation5 + $0x1], 1 }

</bundles_post_ra>
